<compile_context>
chip_gen: v7x
topology: tpu7x:2x2x1
jax: 0.10.0
libtpu: 0.0.40
codegen_flags: <defaults>
</compile_context>

<pallas_src>
import functools

import jax
import jax.numpy as jnp
from jax.experimental import pallas as pl
from jax.experimental.pallas import tpu as pltpu

LANE = 128      # lane width of a vreg
SUBLANE = 8     # sublane count of a vreg


def _round_up(n, m):
    return (n + m - 1) // m * m


# ----------------------------- kernel ------------------------------------- #
def actor_critic_kernel(x_ref, w1_ref, b1_ref, w2_ref, b2_ref, out_ref,
                        *, num_actions):
    x = x_ref[...]                                                    # (Bp, IN_P) f32

    # fused layer 1: [critic_hidden | actor_hidden] in one matmul
    h = jnp.dot(x, w1_ref[...], preferred_element_type=jnp.float32) + b1_ref[...]
    h = jnp.maximum(h, 0.0)                                           # (Bp, H2_P)

    # fused layer 2: block-diagonal weights -> [value | actor_logits | pad]
    o = jnp.dot(h, w2_ref[...], preferred_element_type=jnp.float32) + b2_ref[...]  # (Bp, OUT_P)

    # lane 0 = value, lanes [1, 1+num_actions) = logits, rest = zero padding.
    lane = jax.lax.broadcasted_iota(jnp.int32, o.shape, dimension=1)
    is_logit = jnp.logical_and(lane >= 1, lane < 1 + num_actions)

    # numerically stable softmax over the real logit lanes only
    logits = jnp.where(is_logit, o, -jnp.inf)
    m = jnp.max(logits, axis=-1, keepdims=True)
    e = jnp.exp(logits - m)                                           # padded lanes -> 0
    s = jnp.sum(e, axis=-1, keepdims=True)
    p = e * pl.reciprocal(s, approx=True)                             # EUP divide (free slot)

    # merged lane-dense output: value at lane 0, softmax policy elsewhere
    out_ref[...] = jnp.where(lane == 0, o, p)


# --------------------------- host-side packing ----------------------------- #
def pack_params(params, num_inputs, hidden_size, num_actions):
    """Done once; packed params stay device-resident across calls."""
    in_p = _round_up(num_inputs, LANE)
    h2_p = _round_up(2 * hidden_size, LANE)
    out_p = _round_up(1 + num_actions, LANE)

    w1 = jnp.zeros((in_p, h2_p), jnp.float32)
    w1 = w1.at[:num_inputs, :hidden_size].set(params["cw1"])
    w1 = w1.at[:num_inputs, hidden_size:2 * hidden_size].set(params["aw1"])
    b1 = jnp.zeros((1, h2_p), jnp.float32)
    b1 = b1.at[:, :hidden_size].set(params["cb1"])
    b1 = b1.at[:, hidden_size:2 * hidden_size].set(params["ab1"])

    w2 = jnp.zeros((h2_p, out_p), jnp.float32)                        # block-diagonal
    w2 = w2.at[:hidden_size, 0:1].set(params["cw2"])
    w2 = w2.at[hidden_size:2 * hidden_size, 1:1 + num_actions].set(params["aw2"])
    b2 = jnp.zeros((1, out_p), jnp.float32)
    b2 = b2.at[:, 0:1].set(params["cb2"])
    b2 = b2.at[:, 1:1 + num_actions].set(params["ab2"])

    return dict(w1=w1, b1=b1, w2=w2, b2=b2)


@functools.partial(jax.jit, static_argnames=("num_actions",))
def actor_critic_forward(state, packed, *, num_actions):
    """state: (B, num_inputs) f32 (B=1 matches the module's unsqueeze(0))."""
    b, n_in = state.shape
    in_p = packed["w1"].shape[0]
    out_p = packed["w2"].shape[1]
    bp = max(_round_up(b, SUBLANE), SUBLANE)                          # sublane-dense batch

    x = jnp.zeros((bp, in_p), jnp.float32)
    x = x.at[:b, :n_in].set(state.astype(jnp.float32))

    vmem = pl.BlockSpec(memory_space=pltpu.MemorySpace.VMEM)
    out = pl.pallas_call(
        functools.partial(actor_critic_kernel, num_actions=num_actions),
        out_shape=jax.ShapeDtypeStruct((bp, out_p), jnp.float32),
        in_specs=[vmem] * 5,
        out_specs=vmem,
    )(x, packed["w1"], packed["b1"], packed["w2"], packed["b2"])

    value = out[:b, 0:1]
    policy = out[:b, 1:1 + num_actions]
    return value, policy


# --------------------------- init & reference ------------------------------ #
def init_params(key, num_inputs, num_actions, hidden_size):
    """PyTorch-style init: U(-1/sqrt(fan_in), 1/sqrt(fan_in)); W stored as (in,out)."""
    def linear(key, fan_in, fan_out):
        kw, kb = jax.random.split(key)
        bound = 1.0 / jnp.sqrt(float(fan_in))
        w = jax.random.uniform(kw, (fan_in, fan_out), jnp.float32, -bound, bound)
        b = jax.random.uniform(kb, (1, fan_out), jnp.float32, -bound, bound)
        return w, b

    k1, k2, k3, k4 = jax.random.split(key, 4)
    cw1, cb1 = linear(k1, num_inputs, hidden_size)
    cw2, cb2 = linear(k2, hidden_size, 1)
    aw1, ab1 = linear(k3, num_inputs, hidden_size)
    aw2, ab2 = linear(k4, hidden_size, num_actions)
    return dict(cw1=cw1, cb1=cb1, cw2=cw2, cb2=cb2,
                aw1=aw1, ab1=ab1, aw2=aw2, ab2=ab2)


def reference_forward(state, p):
    h_c = jnp.maximum(state @ p["cw1"] + p["cb1"], 0.0)
    value = h_c @ p["cw2"] + p["cb2"]
    h_a = jnp.maximum(state @ p["aw1"] + p["ab1"], 0.0)
    logits = h_a @ p["aw2"] + p["ab2"]
    return value, jax.nn.softmax(logits, axis=1)


# --------------------------------- main ------------------------------------ #
if __name__ == "__main__":
    num_inputs, num_actions, hidden = 16, 4, 32   # small shapes consistent with the module

    key = jax.random.PRNGKey(0)
    k_state, k_params, k_batch = jax.random.split(key, 3)
    params = init_params(k_params, num_inputs, num_actions, hidden)
    packed = pack_params(params, num_inputs, hidden, num_actions)     # pack once

    # single-state path (matches PyTorch .unsqueeze(0))
    state = jax.random.normal(k_state, (1, num_inputs), jnp.float32)
    value, policy = actor_critic_forward(state, packed, num_actions=num_actions)
    jax.block_until_ready((value, policy))

    value_ref, policy_ref = reference_forward(state, params)
    assert value.shape == (1, 1) and policy.shape == (1, num_actions)
    assert jnp.allclose(value, value_ref, atol=2e-3, rtol=2e-3)
    assert jnp.allclose(policy, policy_ref, atol=2e-3, rtol=2e-3)
    assert jnp.allclose(jnp.sum(policy, axis=1), 1.0, atol=2e-3)

    # batched path (perf recommendation: amortize launch over many states)
    states_b = jax.random.normal(k_batch, (8, num_inputs), jnp.float32)
    vb, pb = actor_critic_forward(states_b, packed, num_actions=num_actions)
    jax.block_until_ready((vb, pb))
    vb_ref, pb_ref = reference_forward(states_b, params)
    assert vb.shape == (8, 1) and pb.shape == (8, num_actions)
    assert jnp.allclose(vb, vb_ref, atol=2e-3, rtol=2e-3)
    assert jnp.allclose(pb, pb_ref, atol=2e-3, rtol=2e-3)

    print("KERNEL_OK")
</pallas_src>

<mosaic_0001>
module attributes {stable_mosaic.version = 11 : i64} {
  func.func @actor_critic_kernel(%arg0: memref<8x128xf32, #tpu.memory_space<vmem>>, %arg1: memref<128x128xf32, #tpu.memory_space<vmem>>, %arg2: memref<1x128xf32, #tpu.memory_space<vmem>>, %arg3: memref<128x128xf32, #tpu.memory_space<vmem>>, %arg4: memref<1x128xf32, #tpu.memory_space<vmem>>, %arg5: memref<8x128xf32, #tpu.memory_space<vmem>>) attributes {dimension_semantics = [], scalar_prefetch = 0 : i64, scratch_operands = 0 : i64, tpu.core_type = #tpu.core_type<tc>} {
    %c0 = arith.constant 0 : index
    %c0_0 = arith.constant 0 : index
    %0 = vector.load %arg0[%c0, %c0_0] : memref<8x128xf32, #tpu.memory_space<vmem>>, vector<8x128xf32>
    %c0_1 = arith.constant 0 : index
    %c0_2 = arith.constant 0 : index
    %1 = vector.load %arg1[%c0_1, %c0_2] : memref<128x128xf32, #tpu.memory_space<vmem>>, vector<128x128xf32>
    %cst = arith.constant dense<0.000000e+00> : vector<8x128xf32>
    %2 = tpu.matmul %0, %1, %cst {dimension_numbers = #tpu.dot_dimension_numbers<[1], [0], [0], [1], [0, 0, 1, 1], [], []>} : vector<8x128xf32>, vector<128x128xf32>, vector<8x128xf32> -> vector<8x128xf32>
    %c0_3 = arith.constant 0 : index
    %c0_4 = arith.constant 0 : index
    %3 = vector.load %arg2[%c0_3, %c0_4] : memref<1x128xf32, #tpu.memory_space<vmem>>, vector<1x128xf32>
    %4 = vector.broadcast %3 : vector<1x128xf32> to vector<8x128xf32>
    %5 = arith.addf %2, %4 : vector<8x128xf32>
    %cst_5 = arith.constant 0.000000e+00 : f32
    %6 = vector.broadcast %cst_5 : f32 to vector<8x128xf32>
    %7 = arith.maximumf %5, %6 : vector<8x128xf32>
    %c0_6 = arith.constant 0 : index
    %c0_7 = arith.constant 0 : index
    %8 = vector.load %arg3[%c0_6, %c0_7] : memref<128x128xf32, #tpu.memory_space<vmem>>, vector<128x128xf32>
    %cst_8 = arith.constant dense<0.000000e+00> : vector<8x128xf32>
    %9 = tpu.matmul %7, %8, %cst_8 {dimension_numbers = #tpu.dot_dimension_numbers<[1], [0], [0], [1], [0, 0, 1, 1], [], []>} : vector<8x128xf32>, vector<128x128xf32>, vector<8x128xf32> -> vector<8x128xf32>
    %c0_9 = arith.constant 0 : index
    %c0_10 = arith.constant 0 : index
    %10 = vector.load %arg4[%c0_9, %c0_10] : memref<1x128xf32, #tpu.memory_space<vmem>>, vector<1x128xf32>
    %11 = vector.broadcast %10 : vector<1x128xf32> to vector<8x128xf32>
    %12 = arith.addf %9, %11 : vector<8x128xf32>
    %13 = tpu.iota {dimensions = array<i32: 1>} : vector<8x128xi32>
    %c1_i32 = arith.constant 1 : i32
    %14 = vector.broadcast %c1_i32 : i32 to vector<8x128xi32>
    %15 = arith.cmpi sge, %13, %14 : vector<8x128xi32>
    %c5_i32 = arith.constant 5 : i32
    %16 = vector.broadcast %c5_i32 : i32 to vector<8x128xi32>
    %17 = arith.cmpi slt, %13, %16 : vector<8x128xi32>
    %18 = arith.andi %15, %17 : vector<8x128xi1>
    %cst_11 = arith.constant 0xFF800000 : f32
    %19 = vector.broadcast %cst_11 : f32 to vector<8x128xf32>
    %20 = arith.select %18, %12, %19 : vector<8x128xi1>, vector<8x128xf32>
    %cst_12 = arith.constant dense<0xFF800000> : vector<8xf32>
    %21 = vector.multi_reduction <maximumf>, %20, %cst_12 [1] : vector<8x128xf32> to vector<8xf32>
    %22 = vector.shape_cast %21 : vector<8xf32> to vector<8x1xf32>
    %23 = vector.broadcast %22 : vector<8x1xf32> to vector<8x128xf32>
    %24 = arith.subf %20, %23 : vector<8x128xf32>
    %25 = math.exp %24 : vector<8x128xf32>
    %cst_13 = arith.constant dense<0.000000e+00> : vector<8xf32>
    %26 = vector.multi_reduction <add>, %25, %cst_13 [1] : vector<8x128xf32> to vector<8xf32>
    %27 = vector.shape_cast %26 : vector<8xf32> to vector<8x1xf32>
    %28 = tpu.reciprocal %27 {approx = true} : vector<8x1xf32> -> vector<8x1xf32>
    %29 = vector.broadcast %28 : vector<8x1xf32> to vector<8x128xf32>
    %30 = arith.mulf %25, %29 : vector<8x128xf32>
    %c0_i32 = arith.constant 0 : i32
    %31 = vector.broadcast %c0_i32 : i32 to vector<8x128xi32>
    %32 = arith.cmpi eq, %13, %31 : vector<8x128xi32>
    %33 = arith.select %32, %12, %30 : vector<8x128xi1>, vector<8x128xf32>
    %c0_14 = arith.constant 0 : index
    %c0_15 = arith.constant 0 : index
    %34 = vector.load %arg5[%c0_14, %c0_15] : memref<8x128xf32, #tpu.memory_space<vmem>>, vector<8x128xf32>
    tpu.vector_store %arg5[%c0_14, %c0_15], %33 {strides = array<i32>} : memref<8x128xf32, #tpu.memory_space<vmem>>, vector<8x128xf32>,
    return
  }
}

</mosaic_0001>

<bundles_post_ra>
// kernel: actor_critic_forward.1
= control target key start
LH: loop header
LB: loop body
LE: loop exit
PB: predicated region body
PF: predicated region fallthrough
CT: control target
= control target key end

     0   :  { %10 = vsyncpa [#allocation3], 0  ;;  %s562_s0 = inlined_call_operand.vmem [shape: f32[8,128], index: 0, kind: input, shape index: {}]   ;;  %s563_s1 = inlined_call_operand.hbm [shape: f32[128,128], index: 1, kind: input, shape index: {}]   ;;  %s564_s2 = inlined_call_operand.vmem [shape: f32[1,128], index: 2, kind: input, shape index: {}]   ;;  %s565_s3 = inlined_call_operand.hbm [shape: f32[128,128], index: 3, kind: input, shape index: {}]   ;;  %s566_s4 = inlined_call_operand.vmem [shape: f32[1,128], index: 4, kind: input, shape index: {}]   ;;  %s567_s5 = inlined_call_operand.vmem [shape: f32[8,128], index: 5, kind: output, shape index: {}]  }
   0x1   :  { %11 = vsyncpa [#allocation5], 0  ;;  %s473_s18 = smov [#allocation2]   ;;  %s425_s22 = scalar_lea.hbm %s563_s1, 2048 }
   0x2   :  { %s19_s19 = sshll.u32 %s473_s18, 4  ;;  %p426_p0 = scmp.ne.s32.totalorder %s563_s1, %s425_s22  ;;  %s20_s19 = int_to_ptr.vmem [resolvable:$true] %s19_s19 }
   0x3   :  { %p429_p1 = scmp.lt.u32.totalorder %s425_s22, %s563_s1 }
   0x5   :  { %p431_p2 = pnand %p429_p1, %p426_p0 }
   0x7   :  { %434 = shalt.err (!%p431_p2)
}
   0x8   :  { %s435_s27 = scalar_lea.vmem %s20_s19, 2048  ;;  %p440_p4 = scmp.lt.s32.totalorder %s20_s19, %s20_s19 }
   0x9   :  { %p436_p3 = scmp.ne.s32.totalorder %s20_s19, %s435_s27  ;;  %p441_p5 = scmp.lt.s32.totalorder %s435_s27, %s435_s27 }
   0xb   :  { %p442_p6 = por %p441_p5, %p440_p4 }
   0xd   :  { %p443_p7 = pnand %p442_p6, %p436_p3 }
   0xf   :  { %446 = shalt.err (!%p443_p7)
}
  0x10   :  { %s474_s28 = smov 128   ;;  %s475_s29 = smov 8  }
  0x11   :  { %25 = dma.hbm_to_vmem [thread:$0]  %s563_s1, 2048, %s20_s19, [#allocation3], %s474_s28, %s474_s28, %s475_s29  }
  0x12   :  { %s476_s7 = smov [#allocation4]   ;;  %s447_s11 = scalar_lea.hbm %s565_s3, 2048 }
  0x13   :  { %s33_s8 = sshll.u32 %s476_s7, 4  ;;  %p448_p8 = scmp.ne.s32.totalorder %s565_s3, %s447_s11  ;;  %s34_s8 = int_to_ptr.vmem [resolvable:$true] %s33_s8 }
  0x14   :  { %p451_p9 = scmp.lt.u32.totalorder %s447_s11, %s565_s3 }
  0x16   :  { %p453_p10 = pnand %p451_p9, %p448_p8 }
  0x18   :  { %456 = shalt.err (!%p453_p10)
}
  0x19   :  { %s457_s16 = scalar_lea.vmem %s34_s8, 2048  ;;  %p462_p12 = scmp.lt.s32.totalorder %s34_s8, %s34_s8 }
  0x1a   :  { %p458_p11 = scmp.ne.s32.totalorder %s34_s8, %s457_s16  ;;  %p463_p13 = scmp.lt.s32.totalorder %s457_s16, %s457_s16 }
  0x1c   :  { %p464_p0 = por %p463_p13, %p462_p12 }
  0x1e   :  { %p465_p1 = pnand %p464_p0, %p458_p11 }
  0x20   :  { %468 = shalt.err (!%p465_p1)
}
  0x21   :  { %39 = dma.hbm_to_vmem [thread:$0]  %s565_s3, 2048, %s34_s8, [#allocation5], %s474_s28, %s474_s28, %s475_s29  }
  0x22   :  { %469 = dma.done.wait [#allocation3], 2048  }
  0x23   :  { %470 = vsyncadd [#allocation3], 4294965248 }
  0x24   :  { %471 = dma.done.wait [#allocation5], 2048  }
  0x25   :  { %472 = vsyncadd [#allocation5], 4294965248  ;;  %v477_v0 = vmov 0.0|0.0   ;;  %vm478_vm0 = vmmov 0   ;;  %v479_v1 = vmov 0.0   ;;  %v49_v2 = vld [vmem:[#allocation2] sm:$0xff]  ;;  %v236_v56 = vlaneseq }
  0x26   :  { %366 = vmatprep.subr.bf16.mxu0 %v477_v0  ;;  %328 = vmatprep.mubr.msk.f32.mxu0 %vm478_vm0, %v479_v1  ;;  %v50_v3 = vld [vmem:[#allocation2 + $0x8] sm:$0xff]  ;;  %v51_v4 = vld [vmem:[#allocation2 + $0x10] sm:$0xff]  ;;  %v52_v6 = vld [vmem:[#allocation2 + $0x18] sm:$0xff] }
  0x27   :  { %390 = vmatprep.subr.bf16.mxu1 %v477_v0  ;;  %363 = vmatprep.mubr.msk.f32.mxu1 %vm478_vm0, %v479_v1  ;;  %v367_v5 = vpack.c.bf16 %v50_v3, %v49_v2  ;;  %v370_v7 = vpack.c.bf16 %v52_v6, %v51_v4  ;;  %v53_v8 = vld [vmem:[#allocation2 + $0x20] sm:$0xff]  ;;  %v54_v9 = vld [vmem:[#allocation2 + $0x28] sm:$0xff]  ;;  %v145_v12 = vld [vmem:[#allocation4 + $0x10] sm:$0xff]  ;;  %v237_v57 = vand.u32 127, %v236_v56 }
  0x28   :  { %v143_v10 = vld [vmem:[#allocation4] sm:$0xff]  ;;  %v144_v11 = vld [vmem:[#allocation4 + $0x8] sm:$0xff]  ;;  %v146_v13 = vld [vmem:[#allocation4 + $0x18] sm:$0xff]  ;;  %v373_v14 = vpack.c.bf16 %v54_v9, %v53_v8 }
  0x29   :  { %368 = vmatpush3.bf16.msra.mxu0 %v367_v5  ;;  %v391_v15 = vpack.c.bf16 %v144_v11, %v143_v10  ;;  %v55_v16 = vld [vmem:[#allocation2 + $0x30] sm:$0xff]  ;;  %v56_v17 = vld [vmem:[#allocation2 + $0x38] sm:$0xff]  ;;  %v394_v18 = vpack.c.bf16 %v146_v13, %v145_v12  ;;  %v147_v19 = vld [vmem:[#allocation4 + $0x20] sm:$0xff]  ;;  %vm238_vm1 = vcmp.ge.s32.totalorder %v237_v57, 1  ;;  %vm239_vm2 = vcmp.lt.s32.totalorder %v237_v57, 5 }
  0x2a   :  { %369 = vmatprep.subr.bf16.mxu0 %v477_v0  ;;  %v148_v20 = vld [vmem:[#allocation4 + $0x28] sm:$0xff]  ;;  %v376_v21 = vpack.c.bf16 %v56_v17, %v55_v16  ;;  %v57_v22 = vld [vmem:[#allocation2 + $0x40] sm:$0xff]  ;;  %v149_v25 = vld [vmem:[#allocation4 + $0x30] sm:$0xff]  ;;  %vm251_vm4 = vcmp.eq.s32.totalorder %v237_v57, 0 }
  0x2b   :  { %392 = vmatpush3.bf16.msra.mxu1 %v391_v15  ;;  %v58_v23 = vld [vmem:[#allocation2 + $0x48] sm:$0xff]  ;;  %v397_v24 = vpack.c.bf16 %v148_v20, %v147_v19  ;;  %v150_v26 = vld [vmem:[#allocation4 + $0x38] sm:$0xff]  ;;  %v59_v28 = vld [vmem:[#allocation2 + $0x50] sm:$0xff] }
  0x2c   :  { %393 = vmatprep.subr.bf16.mxu1 %v477_v0  ;;  %v379_v27 = vpack.c.bf16 %v58_v23, %v57_v22  ;;  %v60_v29 = vld [vmem:[#allocation2 + $0x58] sm:$0xff]  ;;  %v400_v30 = vpack.c.bf16 %v150_v26, %v149_v25  ;;  %v151_v31 = vld [vmem:[#allocation4 + $0x40] sm:$0xff]  ;;  %v152_v32 = vld [vmem:[#allocation4 + $0x48] sm:$0xff] }
  0x2d   :  { %371 = vmatpush3.bf16.msra.mxu0 %v370_v7  ;;  %v382_v33 = vpack.c.bf16 %v60_v29, %v59_v28  ;;  %v61_v34 = vld [vmem:[#allocation2 + $0x60] sm:$0xff]  ;;  %v62_v35 = vld [vmem:[#allocation2 + $0x68] sm:$0xff]  ;;  %v403_v36 = vpack.c.bf16 %v152_v32, %v151_v31  ;;  %v153_v37 = vld [vmem:[#allocation4 + $0x50] sm:$0xff] }
  0x2e   :  { %372 = vmatprep.subr.bf16.mxu0 %v477_v0  ;;  %v154_v38 = vld [vmem:[#allocation4 + $0x58] sm:$0xff]  ;;  %v385_v39 = vpack.c.bf16 %v62_v35, %v61_v34  ;;  %v63_v40 = vld [vmem:[#allocation2 + $0x70] sm:$0xff]  ;;  %v155_v43 = vld [vmem:[#allocation4 + $0x60] sm:$0xff] }
  0x2f   :  { %395 = vmatpush3.bf16.msra.mxu1 %v394_v18  ;;  %v64_v41 = vld [vmem:[#allocation2 + $0x78] sm:$0xff]  ;;  %v406_v42 = vpack.c.bf16 %v154_v38, %v153_v37  ;;  %v156_v44 = vld [vmem:[#allocation4 + $0x68] sm:$0xff]  ;;  %v157_v48 = vld [vmem:[#allocation4 + $0x70] sm:$0xff] }
  0x30   :  { %396 = vmatprep.subr.bf16.mxu1 %v477_v0  ;;  %v388_v45 = vpack.c.bf16 %v64_v41, %v63_v40  ;;  %v409_v46 = vpack.c.bf16 %v156_v44, %v155_v43  ;;  %v48_v47 = vld [vmem:[%s562_s0] sm:$0xff]  ;;  %vm240_vm3 = vmand %vm238_vm1, %vm239_vm2 }
  0x31   :  { %374 = vmatpush3.bf16.msra.mxu0 %v373_v14  ;;  %v158_v49 = vld [vmem:[#allocation4 + $0x78] sm:$0xff] }
  0x32   :  { %375 = vmatprep.subr.bf16.mxu0 %v477_v0  ;;  %v412_v50 = vpack.c.bf16 %v158_v49, %v157_v48  ;;  %v260_v51 = vld [vmem:[%s564_s2] ss:$0 sm:$0xff] }
  0x33   :  { %398 = vmatpush3.bf16.msra.mxu1 %v397_v24  ;;  %v261_v58 = vld [vmem:[%s566_s4] ss:$0 sm:$0xff] }
  0x34   :  { %399 = vmatprep.subr.bf16.mxu1 %v477_v0 }
  0x35   :  { %377 = vmatpush3.bf16.msra.mxu0 %v376_v21 }
  0x36   :  { %378 = vmatprep.subr.bf16.mxu0 %v477_v0 }
  0x37   :  { %401 = vmatpush3.bf16.msra.mxu1 %v400_v30 }
  0x38   :  { %402 = vmatprep.subr.bf16.mxu1 %v477_v0 }
  0x39   :  { %380 = vmatpush3.bf16.msra.mxu0 %v379_v27 }
  0x3a   :  { %381 = vmatprep.subr.bf16.mxu0 %v477_v0 }
  0x3b   :  { %404 = vmatpush3.bf16.msra.mxu1 %v403_v36 }
  0x3c   :  { %405 = vmatprep.subr.bf16.mxu1 %v477_v0 }
  0x3d   :  { %383 = vmatpush3.bf16.msra.mxu0 %v382_v33 }
  0x3e   :  { %384 = vmatprep.subr.bf16.mxu0 %v477_v0 }
  0x3f   :  { %407 = vmatpush3.bf16.msra.mxu1 %v406_v42 }
  0x40   :  { %408 = vmatprep.subr.bf16.mxu1 %v477_v0 }
  0x41   :  { %386 = vmatpush3.bf16.msra.mxu0 %v385_v39 }
  0x42   :  { %387 = vmatprep.subr.bf16.mxu0 %v477_v0 }
  0x43   :  { %410 = vmatpush3.bf16.msra.mxu1 %v409_v46 }
  0x44   :  { %411 = vmatprep.subr.bf16.mxu1 %v477_v0 }
  0x45   :  { %389 = vmatpush3.bf16.msra.mxu0 %v388_v45 }
  0x47   :  { %413 = vmatpush3.bf16.msra.mxu1 %v412_v50 }
  0x48   :  { %329 = vmatmul.mubr.f32.vlgmr.msra.gmra.mrb[0].mxu0 %v48_v47 }
 0x11b   :  { %v138_v52 = vpop.f32.mrb[0].mxu0 }
 0x11c   :  { %v139_v53 = vadd.f32 %v260_v51, %v138_v52  ;;  %v330_v54 = vpop.f32.mrb[1].mxu0 }
 0x11e   :  { %v142_v55 = vmax.f32 %v139_v53, 0.0 }
 0x120   :  { %364 = vmatmul.mubr.f32.vlgmr.msra.gmra.mrb[0].mxu1 %v142_v55 }
 0x1f3   :  { %v232_v59 = vpop.f32.mrb[0].mxu1 }
 0x1f4   :  { %v233_v60 = vadd.f32 %v261_v58, %v232_v59  ;;  %v365_v61 = vpop.f32.mrb[1].mxu1 }
 0x1f6   :  { %v241_v62 = vsel %vm240_vm3, %v233_v60, -inf }
 0x1f7   :  { %242 = vmax.xlane.f32.xlu0 %v241_v62 }
 0x284   :  { %v243_v63 = vpop.xlane.xlu0 %242 }
 0x285   :  { %v244_v0 = vsub.f32 %v241_v62, %v243_v63 }
 0x287   :  { %v245_v1 = vmul.f32 1.442695, %v244_v0 }
 0x289   :  { %421 = vpow2.f32 %v245_v1 }
 0x293   :  { %v422_v2 = vpop.eup %421 }
 0x294   :  { %247 = vadd.xlane.f32.xlu0 %v422_v2 }
 0x321   :  { %v248_v3 = vpop.xlane.xlu0 %247 }
 0x322   :  { %423 = vrcp.f32 %v248_v3 }
 0x32c   :  { %v424_v4 = vpop.eup %423 }
 0x32d   :  { %v250_v5 = vmul.f32 %v424_v4, %v422_v2 }
 0x32f   :  { %v252_v6 = vsel %vm251_vm4, %v233_v60, %v250_v5 }
 0x330   :  { %253 = vst [vmem:[%s567_s5] sm:$0xff] %v252_v6 }
 0x331   :  { %258 = vsyncpa [#allocation3], 1 }
 0x332   :  { %259 = vsyncpa [#allocation5], 1 }

</bundles_post_ra>
